<compile_context>
chip_gen: v7x
topology: tpu7x:2x2x1
jax: 0.10.0
libtpu: 0.0.40
codegen_flags: <defaults>
</compile_context>

<pallas_src>
import math

import numpy as np
import jax
import jax.numpy as jnp
from jax.experimental import pallas as pl
from jax.experimental.pallas import tpu as pltpu

_A = -0.75  # PyTorch bicubic coefficient


# ----------------------------------------------------------------------------
# Host-side construction of the (linear) resample operator, matching the torch
# reference: sinc / lanczos / ramp / reflect-pad conv / bicubic align_corners.
# ----------------------------------------------------------------------------
def _np_ramp(ratio, width):
    n = math.ceil(width / ratio + 1)
    out = []
    cur = 0.0
    for _ in range(n):
        out.append(cur)
        cur += ratio
    out = np.asarray(out, dtype=np.float64)
    return np.concatenate([-out[1:][::-1], out])[1:-1]


def _np_lanczos(x, a):
    x = np.asarray(x, dtype=np.float64)
    # np.sinc is the normalized sinc == torch sinc(x) with sinc(0)=1
    out = np.where(np.logical_and(-a < x, x < a), np.sinc(x) * np.sinc(x / a), 0.0)
    return out / out.sum()


def _lanczos_matrix(size, target):
    """(size, size) matrix: reflect-pad + 1-D lanczos low-pass along one axis.

    Matches `resample`: the filter is only applied when downsampling
    (target < size); otherwise it is the identity.
    """
    if target >= size:
        return np.eye(size, dtype=np.float64)
    k = _np_lanczos(_np_ramp(target / size, 2), 2)
    kh = k.shape[0]                      # always odd (2n-3)
    pad = (kh - 1) // 2
    assert pad < size                    # same constraint as F.pad(..., 'reflect')
    L = np.zeros((size, size), dtype=np.float64)
    for i in range(size):
        for t in range(kh):
            j = i + t - pad
            if j < 0:                    # PyTorch 'reflect' (no edge repeat)
                j = -j
            elif j >= size:
                j = 2 * (size - 1) - j
            L[i, j] += k[t]
    return L


def _cubic_weight(x):
    x = abs(x)
    if x <= 1.0:
        return ((_A + 2.0) * x - (_A + 3.0)) * x * x + 1.0
    if x < 2.0:
        return ((_A * x - 5.0 * _A) * x + 8.0 * _A) * x - 4.0 * _A
    return 0.0


def _bicubic_matrix(out_size, in_size):
    """(out_size, in_size) matrix of F.interpolate(mode='bicubic', align_corners=True)."""
    B = np.zeros((out_size, in_size), dtype=np.float64)
    if in_size == 1:
        B[:, 0] = 1.0
        return B
    scale = (in_size - 1) / (out_size - 1) if out_size > 1 else 0.0
    for o in range(out_size):
        s = o * scale
        i0 = int(math.floor(s))
        t = s - i0
        for m in range(-1, 3):           # taps i0-1 .. i0+2, index-clamped
            idx = min(max(i0 + m, 0), in_size - 1)
            B[o, idx] += _cubic_weight(m - t)
    return B


def _resample_matrix(size, cut_size):
    """(cut_size, size) operator == lanczos AA (if downsampling) then bicubic."""
    return (_bicubic_matrix(cut_size, size) @ _lanczos_matrix(size, cut_size)).astype(np.float32)


def _build_cutout_operators(sideY, sideX, cut_size, cutn, cut_pow, key):
    """Per-cutout operators AH (cutn, cut_size, sideY), AW (cutn, cut_size, sideX).

    The random crop is folded in: columns outside [offset, offset+size) are 0.
    Size/offset draws are host-side ints, mirroring the torch module.
    """
    max_size = min(sideX, sideY)
    min_size = min(sideX, sideY, cut_size)
    AH = np.zeros((cutn, cut_size, sideY), dtype=np.float32)
    AW = np.zeros((cutn, cut_size, sideX), dtype=np.float32)
    keys = jax.random.split(key, 3 * cutn)
    for i in range(cutn):
        u = float(jax.random.uniform(keys[3 * i], ()))
        size = int(u ** cut_pow * (max_size - min_size) + min_size)
        oy = int(jax.random.randint(keys[3 * i + 1], (), 0, sideY - size + 1))
        ox = int(jax.random.randint(keys[3 * i + 2], (), 0, sideX - size + 1))
        A = _resample_matrix(size, cut_size)
        AH[i, :, oy:oy + size] = A
        AW[i, :, ox:ox + size] = A
    return jnp.asarray(AH), jnp.asarray(AW)


# ----------------------------------------------------------------------------
# Pallas kernel: one grid step per cutout.
# ----------------------------------------------------------------------------
def _cutout_kernel(facs_ref, ah_ref, aw_ref, x_ref, noise_ref, o_ref):
    """Grid axis 0 = cutout index i.

    facs_ref  : (cutn,)          f32 SMEM   per-cutout noise scale
    ah_ref    : (1, cs, H)       f32 VMEM   row operator for this cutout
    aw_ref    : (1, cs, W)       f32 VMEM   column operator for this cutout
    x_ref     : (C, H, W)        f32 VMEM   source image (resident across grid)
    noise_ref : (1, C, cs, cs)   f32 VMEM   gaussian noise for this cutout
    o_ref     : (1, C, cs, cs)   f32 VMEM   resampled cutout
    """
    i = pl.program_id(0)
    fac = facs_ref[i]
    ah = ah_ref[0]                               # (cs, H)
    aw = aw_ref[0]                               # (cs, W)
    C = x_ref.shape[0]
    for ch in range(C):                          # n*c is small for images; static unroll
        xc = x_ref[ch]                           # (H, W)
        # rows: t[o, w] = sum_h ah[o, h] * x[ch, h, w]      (MXU)
        t = jax.lax.dot_general(ah, xc, (((1,), (0,)), ((), ())),
                                preferred_element_type=jnp.float32)     # (cs, W)
        # cols: r[o, p] = sum_w t[o, w] * aw[p, w]          (MXU)
        r = jax.lax.dot_general(t, aw, (((1,), (1,)), ((), ())),
                                preferred_element_type=jnp.float32)     # (cs, cs)
        # fused noise epilogue (torch: batch + facs * randn_like(batch))
        o_ref[0, ch] = r + fac * noise_ref[0, ch]


def cutouts_resample_pallas(x_flat, AH, AW, facs, noise):
    """(cutn, C, cs, cs) resampled cutouts (+noise) from a (C, H, W) image."""
    C, H, W = x_flat.shape
    cutn, cs, _ = AH.shape
    grid_spec = pltpu.PrefetchScalarGridSpec(
        num_scalar_prefetch=0,
        grid=(cutn,),
        in_specs=[
            pl.BlockSpec(memory_space=pltpu.MemorySpace.SMEM),       # facs (cutn,)
            pl.BlockSpec((1, cs, H), lambda i: (i, 0, 0)),           # AH per-cutout
            pl.BlockSpec((1, cs, W), lambda i: (i, 0, 0)),           # AW per-cutout
            pl.BlockSpec((C, H, W), lambda i: (0, 0, 0)),            # image, resident
            pl.BlockSpec((1, C, cs, cs), lambda i: (i, 0, 0, 0)),    # per-cutout noise
        ],
        out_specs=pl.BlockSpec((1, C, cs, cs), lambda i: (i, 0, 0, 0)),
    )
    return pl.pallas_call(
        _cutout_kernel,
        out_shape=jax.ShapeDtypeStruct((cutn, C, cs, cs), jnp.float32),
        grid_spec=grid_spec,
        compiler_params=pltpu.CompilerParams(dimension_semantics=("parallel",)),
    )(facs, AH, AW, x_flat, noise)


def make_cutouts_update(x, *, cut_size, cutn, cut_pow=1.0, noise_fac=0.1, key):
    """Forward pass of MakeCutoutsUpdate (kornia augs applied as identity)."""
    x = jnp.asarray(x, jnp.float32)
    n, c, sideY, sideX = x.shape
    k_cuts, k_fac, k_noise = jax.random.split(key, 3)

    AH, AW = _build_cutout_operators(sideY, sideX, cut_size, cutn, cut_pow, k_cuts)
    if noise_fac:
        facs = jax.random.uniform(k_fac, (cutn,), dtype=jnp.float32,
                                  minval=0.0, maxval=noise_fac)
    else:
        facs = jnp.zeros((cutn,), jnp.float32)
    noise = jax.random.normal(k_noise, (cutn, n * c, cut_size, cut_size), jnp.float32)

    x_flat = x.reshape(n * c, sideY, sideX)
    out = cutouts_resample_pallas(x_flat, AH, AW, facs, noise)    # (cutn, n*c, cs, cs)
    batch = out.reshape(cutn * n, c, cut_size, cut_size)
    return batch, (x_flat, AH, AW, facs, noise)


def cutouts_resample_ref(x_flat, AH, AW, facs, noise):
    """Pure-JAX reference for the kernel math (same folded operators)."""
    r = jnp.einsum('ioh,chw,ipw->icop', AH, x_flat, AW,
                   precision=jax.lax.Precision.HIGHEST)
    return r + facs[:, None, None, None] * noise


if __name__ == "__main__":
    key = jax.random.PRNGKey(0)
    k_img, k_cut = jax.random.split(key)

    # Small, module-consistent shapes: one 3x32x32 image, 4 cutouts of size 16.
    n, c, sideY, sideX = 1, 3, 32, 32
    cut_size, cutn, cut_pow, noise_fac = 16, 4, 1.0, 0.1

    x = jax.random.normal(k_img, (n, c, sideY, sideX), dtype=jnp.float32)

    batch, (x_flat, AH, AW, facs, noise) = make_cutouts_update(
        x, cut_size=cut_size, cutn=cutn, cut_pow=cut_pow,
        noise_fac=noise_fac, key=k_cut)
    batch = jax.block_until_ready(batch)
    assert batch.shape == (cutn * n, c, cut_size, cut_size), batch.shape

    ref = cutouts_resample_ref(x_flat, AH, AW, facs, noise)
    ref = ref.reshape(cutn * n, c, cut_size, cut_size)
    err = jnp.max(jnp.abs(batch - ref))
    assert jnp.allclose(batch, ref, rtol=5e-3, atol=5e-3), float(err)

    print("KERNEL_OK")
</pallas_src>

<mosaic_0001>
module attributes {stable_mosaic.version = 11 : i64} {
  func.func @_cutout_kernel(%arg0: i32, %arg1: memref<4xf32, #tpu.memory_space<smem>>, %arg2: memref<1x16x32xf32, #tpu.memory_space<vmem>>, %arg3: memref<1x16x32xf32, #tpu.memory_space<vmem>>, %arg4: memref<3x32x32xf32, #tpu.memory_space<vmem>>, %arg5: memref<1x3x16x16xf32, #tpu.memory_space<vmem>>, %arg6: memref<1x3x16x16xf32, #tpu.memory_space<vmem>>) attributes {dimension_semantics = [#tpu.dimension_semantics<parallel>], iteration_bounds = array<i64: 4>, scalar_prefetch = 0 : i64, scratch_operands = 0 : i64, tpu.core_type = #tpu.core_type<tc>, window_params = [{transform_indices = @transform_0, window_bounds = array<i64: 4>}, {transform_indices = @transform_1, window_bounds = array<i64: 1, 16, 32>}, {transform_indices = @transform_2, window_bounds = array<i64: 1, 16, 32>}, {pipeline_mode = #tpu.pipeline_mode<synchronous>, transform_indices = @transform_3, window_bounds = array<i64: 3, 32, 32>}, {transform_indices = @transform_4, window_bounds = array<i64: 1, 3, 16, 16>}, {transform_indices = @transform_5, window_bounds = array<i64: 1, 3, 16, 16>}]} {
    %0 = arith.index_cast %arg0 : i32 to index
    %1 = memref.load %arg1[%0] : memref<4xf32, #tpu.memory_space<smem>>
    %c0 = arith.constant 0 : index
    %c0_0 = arith.constant 0 : index
    %c0_1 = arith.constant 0 : index
    %2 = vector.load %arg2[%c0, %c0_0, %c0_1] : memref<1x16x32xf32, #tpu.memory_space<vmem>>, vector<1x16x32xf32>
    %3 = vector.shape_cast %2 : vector<1x16x32xf32> to vector<16x32xf32>
    %c0_2 = arith.constant 0 : index
    %c0_3 = arith.constant 0 : index
    %c0_4 = arith.constant 0 : index
    %4 = vector.load %arg3[%c0_2, %c0_3, %c0_4] : memref<1x16x32xf32, #tpu.memory_space<vmem>>, vector<1x16x32xf32>
    %5 = vector.shape_cast %4 : vector<1x16x32xf32> to vector<16x32xf32>
    %c0_5 = arith.constant 0 : index
    %c0_6 = arith.constant 0 : index
    %c0_7 = arith.constant 0 : index
    %6 = vector.load %arg4[%c0_5, %c0_6, %c0_7] : memref<3x32x32xf32, #tpu.memory_space<vmem>>, vector<1x32x32xf32>
    %7 = vector.shape_cast %6 : vector<1x32x32xf32> to vector<32x32xf32>
    %cst = arith.constant dense<0.000000e+00> : vector<16x32xf32>
    %8 = tpu.matmul %3, %7, %cst {dimension_numbers = #tpu.dot_dimension_numbers<[1], [0], [0], [1], [0, 0, 1, 1], [], []>} : vector<16x32xf32>, vector<32x32xf32>, vector<16x32xf32> -> vector<16x32xf32>
    %cst_8 = arith.constant dense<0.000000e+00> : vector<16x16xf32>
    %9 = tpu.matmul %8, %5, %cst_8 {dimension_numbers = #tpu.dot_dimension_numbers<[1], [1], [0], [0], [0, 0, 1, 0], [], []>} : vector<16x32xf32>, vector<16x32xf32>, vector<16x16xf32> -> vector<16x16xf32>
    %c0_9 = arith.constant 0 : index
    %c0_10 = arith.constant 0 : index
    %c0_11 = arith.constant 0 : index
    %c0_12 = arith.constant 0 : index
    %10 = vector.load %arg5[%c0_9, %c0_10, %c0_11, %c0_12] : memref<1x3x16x16xf32, #tpu.memory_space<vmem>>, vector<1x1x16x16xf32>
    %11 = vector.shape_cast %10 : vector<1x1x16x16xf32> to vector<16x16xf32>
    %12 = vector.broadcast %1 : f32 to vector<16x16xf32>
    %13 = arith.mulf %12, %11 : vector<16x16xf32>
    %14 = arith.addf %9, %13 : vector<16x16xf32>
    %c0_13 = arith.constant 0 : index
    %c0_14 = arith.constant 0 : index
    %c0_15 = arith.constant 0 : index
    %c0_16 = arith.constant 0 : index
    %15 = vector.load %arg6[%c0_13, %c0_14, %c0_15, %c0_16] : memref<1x3x16x16xf32, #tpu.memory_space<vmem>>, vector<1x1x16x16xf32>
    %16 = vector.shape_cast %15 : vector<1x1x16x16xf32> to vector<16x16xf32>
    %17 = vector.shape_cast %14 : vector<16x16xf32> to vector<1x1x16x16xf32>
    tpu.vector_store %arg6[%c0_13, %c0_14, %c0_15, %c0_16], %17 {strides = array<i32>} : memref<1x3x16x16xf32, #tpu.memory_space<vmem>>, vector<1x1x16x16xf32>,
    %c1 = arith.constant 1 : index
    %c0_17 = arith.constant 0 : index
    %c0_18 = arith.constant 0 : index
    %18 = vector.load %arg4[%c1, %c0_17, %c0_18] : memref<3x32x32xf32, #tpu.memory_space<vmem>>, vector<1x32x32xf32>
    %19 = vector.shape_cast %18 : vector<1x32x32xf32> to vector<32x32xf32>
    %cst_19 = arith.constant dense<0.000000e+00> : vector<16x32xf32>
    %20 = tpu.matmul %3, %19, %cst_19 {dimension_numbers = #tpu.dot_dimension_numbers<[1], [0], [0], [1], [0, 0, 1, 1], [], []>} : vector<16x32xf32>, vector<32x32xf32>, vector<16x32xf32> -> vector<16x32xf32>
    %cst_20 = arith.constant dense<0.000000e+00> : vector<16x16xf32>
    %21 = tpu.matmul %20, %5, %cst_20 {dimension_numbers = #tpu.dot_dimension_numbers<[1], [1], [0], [0], [0, 0, 1, 0], [], []>} : vector<16x32xf32>, vector<16x32xf32>, vector<16x16xf32> -> vector<16x16xf32>
    %c0_21 = arith.constant 0 : index
    %c1_22 = arith.constant 1 : index
    %c0_23 = arith.constant 0 : index
    %c0_24 = arith.constant 0 : index
    %22 = vector.load %arg5[%c0_21, %c1_22, %c0_23, %c0_24] : memref<1x3x16x16xf32, #tpu.memory_space<vmem>>, vector<1x1x16x16xf32>
    %23 = vector.shape_cast %22 : vector<1x1x16x16xf32> to vector<16x16xf32>
    %24 = vector.broadcast %1 : f32 to vector<16x16xf32>
    %25 = arith.mulf %24, %23 : vector<16x16xf32>
    %26 = arith.addf %21, %25 : vector<16x16xf32>
    %c0_25 = arith.constant 0 : index
    %c1_26 = arith.constant 1 : index
    %c0_27 = arith.constant 0 : index
    %c0_28 = arith.constant 0 : index
    %27 = vector.load %arg6[%c0_25, %c1_26, %c0_27, %c0_28] : memref<1x3x16x16xf32, #tpu.memory_space<vmem>>, vector<1x1x16x16xf32>
    %28 = vector.shape_cast %27 : vector<1x1x16x16xf32> to vector<16x16xf32>
    %29 = vector.shape_cast %26 : vector<16x16xf32> to vector<1x1x16x16xf32>
    tpu.vector_store %arg6[%c0_25, %c1_26, %c0_27, %c0_28], %29 {strides = array<i32>} : memref<1x3x16x16xf32, #tpu.memory_space<vmem>>, vector<1x1x16x16xf32>,
    %c2 = arith.constant 2 : index
    %c0_29 = arith.constant 0 : index
    %c0_30 = arith.constant 0 : index
    %30 = vector.load %arg4[%c2, %c0_29, %c0_30] : memref<3x32x32xf32, #tpu.memory_space<vmem>>, vector<1x32x32xf32>
    %31 = vector.shape_cast %30 : vector<1x32x32xf32> to vector<32x32xf32>
    %cst_31 = arith.constant dense<0.000000e+00> : vector<16x32xf32>
    %32 = tpu.matmul %3, %31, %cst_31 {dimension_numbers = #tpu.dot_dimension_numbers<[1], [0], [0], [1], [0, 0, 1, 1], [], []>} : vector<16x32xf32>, vector<32x32xf32>, vector<16x32xf32> -> vector<16x32xf32>
    %cst_32 = arith.constant dense<0.000000e+00> : vector<16x16xf32>
    %33 = tpu.matmul %32, %5, %cst_32 {dimension_numbers = #tpu.dot_dimension_numbers<[1], [1], [0], [0], [0, 0, 1, 0], [], []>} : vector<16x32xf32>, vector<16x32xf32>, vector<16x16xf32> -> vector<16x16xf32>
    %c0_33 = arith.constant 0 : index
    %c2_34 = arith.constant 2 : index
    %c0_35 = arith.constant 0 : index
    %c0_36 = arith.constant 0 : index
    %34 = vector.load %arg5[%c0_33, %c2_34, %c0_35, %c0_36] : memref<1x3x16x16xf32, #tpu.memory_space<vmem>>, vector<1x1x16x16xf32>
    %35 = vector.shape_cast %34 : vector<1x1x16x16xf32> to vector<16x16xf32>
    %36 = vector.broadcast %1 : f32 to vector<16x16xf32>
    %37 = arith.mulf %36, %35 : vector<16x16xf32>
    %38 = arith.addf %33, %37 : vector<16x16xf32>
    %c0_37 = arith.constant 0 : index
    %c2_38 = arith.constant 2 : index
    %c0_39 = arith.constant 0 : index
    %c0_40 = arith.constant 0 : index
    %39 = vector.load %arg6[%c0_37, %c2_38, %c0_39, %c0_40] : memref<1x3x16x16xf32, #tpu.memory_space<vmem>>, vector<1x1x16x16xf32>
    %40 = vector.shape_cast %39 : vector<1x1x16x16xf32> to vector<16x16xf32>
    %41 = vector.shape_cast %38 : vector<16x16xf32> to vector<1x1x16x16xf32>
    tpu.vector_store %arg6[%c0_37, %c2_38, %c0_39, %c0_40], %41 {strides = array<i32>} : memref<1x3x16x16xf32, #tpu.memory_space<vmem>>, vector<1x1x16x16xf32>,
    return
  }
  func.func @transform_0(%arg0: i32) -> i32 {
    %c0_i32 = arith.constant 0 : i32
    %c0_i32_0 = arith.constant 0 : i32
    return %c0_i32 : i32
  }
  func.func @transform_1(%arg0: i32) -> (i32, i32, i32) {
    %c0_i32 = arith.constant 0 : i32
    %c0_i32_0 = arith.constant 0 : i32
    %c0_i32_1 = arith.constant 0 : i32
    return %arg0, %c0_i32, %c0_i32_0 : i32, i32, i32
  }
  func.func @transform_2(%arg0: i32) -> (i32, i32, i32) {
    %c0_i32 = arith.constant 0 : i32
    %c0_i32_0 = arith.constant 0 : i32
    %c0_i32_1 = arith.constant 0 : i32
    return %arg0, %c0_i32, %c0_i32_0 : i32, i32, i32
  }
  func.func @transform_3(%arg0: i32) -> (i32, i32, i32) {
    %c0_i32 = arith.constant 0 : i32
    %c0_i32_0 = arith.constant 0 : i32
    %c0_i32_1 = arith.constant 0 : i32
    %c0_i32_2 = arith.constant 0 : i32
    return %c0_i32, %c0_i32_0, %c0_i32_1 : i32, i32, i32
  }
  func.func @transform_4(%arg0: i32) -> (i32, i32, i32, i32) {
    %c0_i32 = arith.constant 0 : i32
    %c0_i32_0 = arith.constant 0 : i32
    %c0_i32_1 = arith.constant 0 : i32
    %c0_i32_2 = arith.constant 0 : i32
    return %arg0, %c0_i32, %c0_i32_0, %c0_i32_1 : i32, i32, i32, i32
  }
  func.func @transform_5(%arg0: i32) -> (i32, i32, i32, i32) {
    %c0_i32 = arith.constant 0 : i32
    %c0_i32_0 = arith.constant 0 : i32
    %c0_i32_1 = arith.constant 0 : i32
    %c0_i32_2 = arith.constant 0 : i32
    return %arg0, %c0_i32, %c0_i32_0, %c0_i32_1 : i32, i32, i32, i32
  }
}

</mosaic_0001>

<bundles_post_ra>
// kernel: tpu_custom_call.1
= control target key start
LH: loop header
LB: loop body
LE: loop exit
PB: predicated region body
PF: predicated region fallthrough
CT: control target
= control target key end

     0   :  { %s1917_s0 = inlined_call_operand.hbm [shape: f32[4], index: 0, kind: input, shape index: {}]   ;;  %s1918_s1 = inlined_call_operand.hbm [shape: f32[4,16,32], index: 1, kind: input, shape index: {}]   ;;  %s1919_s2 = inlined_call_operand.hbm [shape: f32[4,16,32], index: 2, kind: input, shape index: {}]   ;;  %s1920_s3 = inlined_call_operand.hbm [shape: f32[3,32,32], index: 3, kind: input, shape index: {}]   ;;  %s1921_s4 = inlined_call_operand.hbm [shape: f32[4,3,16,16], index: 4, kind: input, shape index: {}]   ;;  %s1922_s5 = inlined_call_operand.hbm [shape: f32[4,3,16,16], index: 5, kind: output, shape index: {}]  }
   0x1   :  { %1932 = sst [smem:[#allocation21_spill]] %s1917_s0 }
   0x2   :  { %1933 = sst [smem:[#allocation22_spill]] %s1918_s1 }
   0x3   :  { %1934 = sst [smem:[#allocation23_spill]] %s1920_s3 }
   0x4   :  { %10 = vsyncpa [#allocation5], 0 }
   0x5   :  { %11 = vsyncpa [#allocation3], 0 }
   0x6   :  { %13 = vsyncpa [#allocation3 + $0x1], 0 }
   0x7   :  { %14 = vsyncpa [#allocation8], 0 }
   0x8   :  { %16 = vsyncpa [#allocation8 + $0x1], 0 }
   0x9   :  { %17 = vsyncpa [#allocation11], 0 }
   0xa   :  { %19 = vsyncpa [#allocation11 + $0x1], 0 }
   0xb   :  { %20 = vsyncpa [#allocation4], 0 }
   0xc   :  { %22 = vsyncpa [#allocation4 + $0x1], 0  ;;  %s1541_s18 = smov 0   ;;  %s1543_s19 = smov 0  }
   0xd   :  { %s1545_s20 = smov 0   ;;  %s1547_s21 = smov 0  }
   0xe LB: > { %1935 = sst [smem:[#allocation19_spill]] %s1495_s20  ;;  %s1562_s22 = sadd.s32 4294967295, %s1499_s21   ;;  %s1499_s21 = sphi %s1547_s21, %s1967_s21   ;;  %s1495_s20 = sphi %s1545_s20, %s1964_s20   ;;  %s1491_s19 = sphi %s1543_s19, %s1966_s19   ;;  %s1487_s18 = sphi %s1541_s18, %s1965_s18  }
   0xf   : > { %s1027_s23 = sadd.s32 4294967294, %s1499_s21   ;;  %s1566_s24 = sadd.s32 1, %s1499_s21  }
  0x10   : > { %s56_s25 = sadd.s32 1, %s1495_s20  ;;  %s53_s26 = ssub.s32 %s1499_s21, %s1566_s24 }
  0x11   : > { %p63_p0 = scmp.ne.s32.totalorder %s1495_s20, %s1491_s19  ;;  %p54_p1 = scmp.eq.s32.totalorder %s53_s26, 0 }
  0x12   : > { %p64_p2 = scmp.eq.s32.totalorder %s1499_s21, 0  ;;  %p69_p3 = scmp.ne.s32.totalorder %s1491_s19, %s1487_s18 }
  0x13   : > { %p1923_p4 = scmp.eq.s32.totalorder %s1562_s22, 0  ;;  %p166_p7 = scmp.eq.s32.totalorder %s1562_s22, 3 }
  0x14   : > { %s1578_s27 = scalar_select %p54_p1, %s1495_s20, %s56_s25  }
  0x15   : > { %p1580_p5 = por %p64_p2, %p63_p0  ;;  %p1586_p6 = por %p1923_p4, %p69_p3 }
  0x16   : > { %1936 = sst [smem:[#allocation20_spill]] %s1578_s27  ;;  %p172_p8 = scmp.eq.s32.totalorder %s1027_s23, 3 }
  0x17   : > { %s1937_s28 = scalar_select %p1580_p5, 1, 0 }
  0x18   : > { %s1938_s29 = scalar_select %p1586_p6, 1, 0 }
  0x19   : > { %p1028_p9 = scmp.ge.s32.totalorder %s1499_s21, 1  ;;  %p179_p10 = scmp.lt.s32.totalorder %s1499_s21, 5 }
  0x1a   : > { %p1593_p11 = por %p166_p7, %p63_p0  ;;  %p1597_p12 = por %p172_p8, %p69_p3 }
  0x1b   : > { %p1601_p13 = pnand %p1028_p9, %p179_p10  ;;  %s1501_s8 = smov [#allocation9]  }
  0x1c   : > { %s1939_s30 = scalar_select %p1593_p11, 1, 0 }
  0x1d   : > { %s1940_s6 = scalar_select %p1597_p12, 1, 0 }
  0x1e   : > { %s1941_s7 = scalar_select %p1601_p13, 1, 0 }
  0x1f   : > { %p1221_p1 = pneg %p1601_p13  ;;  %s200_s9 = sshll.u32 %s1501_s8, 4  ;;  %s201_s9 = int_to_ptr.vmem [resolvable:$true] %s200_s9 }
  0x20   : > { %s1615_s11 = sand.u32 1, %s1495_s20   ;;  %s1943_s3 = sld [smem:[#allocation23_spill]] }
  0x21   : > { %p1609_p2 = pnand %p1221_p1, %p1923_p4 }
  0x23   : > { %p1288_p7 = pneg %p1609_p2 }
  0x26   : > { %s1286_s14 = scalar_lea.hbm %s1943_s3, 1536 }
  0x27   : > { %p1287_p3 = scmp.ne.s32.totalorder %s1943_s3, %s1286_s14  ;;  %p1293_p10 = scmp.lt.u32.totalorder %s1286_s14, %s1943_s3 }
  0x29   : > { %p1289_p8 = pnand %p1288_p7, %p1287_p3 }
  0x2b   : > { %p1290_p9 = pneg %p1289_p8 }
  0x2d   : > { %p1295_p1 = pnand %p1293_p10, %p1290_p9 }
  0x2f   : > { %1298 = shalt.err (!%p1295_p1)
}
  0x30   : > { %s1299_s25 = scalar_lea.vmem %s201_s9, 1536  ;;  %p1307_p11 = scmp.lt.s32.totalorder %s201_s9, %s201_s9 }
  0x31   : > { %p1300_p4 = scmp.ne.s32.totalorder %s201_s9, %s1299_s25  ;;  %p1308_p6 = scmp.lt.s32.totalorder %s1299_s25, %s1299_s25 }
  0x33   : > { %p1302_p0 = pnand %p1300_p4, %p1288_p7  ;;  %p1309_p13 = por %p1308_p6, %p1307_p11 }
  0x35   : > { %p1303_p12 = pneg %p1302_p0 }
  0x37   : > { %p1310_p5 = pnand %p1309_p13, %p1303_p12 }
  0x39   : > { %1313 = shalt.err (!%p1310_p5)
}
  0x3a   : > { %s1927_s26 = smov 128   ;;  %s1929_s8 = smov 8  }
  0x3b   : > { %1227 = dma.hbm_to_vmem [thread:$0]  (!%p1609_p2), %s1943_s3, 1536, %s201_s9, [#allocation8], %s1927_s26, %s1927_s26, %s1929_s8  }
  0x3c   : > { %s1944_s0 = sld [smem:[#allocation21_spill]] }
  0x42   : > { %s1314_s16 = scalar_lea.hbm %s1944_s0, 16 }
  0x43   : > { %p1315_p4 = scmp.ne.s32.totalorder %s1944_s0, %s1314_s16  ;;  %p1321_p11 = scmp.lt.u32.totalorder %s1314_s16, %s1944_s0 }
  0x45   : > { %p1317_p5 = pnand %p1315_p4, %p1288_p7 }
  0x47   : > { %p1318_p6 = pneg %p1317_p5 }
  0x49   : > { %p1323_p12 = pnand %p1321_p11, %p1318_p6 }
  0x4b   : > { %1326 = shalt.err (!%p1323_p12)
}
  0x4c   : > { %s1504_s12 = smov [#allocation2]   ;;  %s1032_s14 = sshll.u32 %s1615_s11, 4 }
  0x4d   : > { %1224 = dma.hbm_to_smem (!%p1609_p2), %s1944_s0, 16, %s1504_s12, [#allocation5]  }
  0x4e   : > { %s1073_s15 = sshll.u32 %s1499_s21, 8  ;;  %s1945_s1 = sld [smem:[#allocation22_spill]] }
  0x4f   : > { %s218_s10 = scalar_lea.vmem [#allocation6], %s1032_s14  ;;  %p1946_p13 = scmp.ne.s32.totalorder %s1937_s28, 0 }
  0x50   : > { %s225_s16 = sshll.u32 %s218_s10, 4  ;;  %p1947_p0 = scmp.lt.s32.totalorder %s1499_s21, 4  ;;  %s1666_s16 = int_to_ptr.vmem [resolvable:$true] %s225_s16 }
  0x51   : > { %s1679_s13 = scalar_lea.hbm %s1919_s2, %s1073_s15  ;;  %s1681_s17 = scalar_lea.vmem [#allocation7], %s1032_s14 }
  0x52   : > { %p1672_p3 = pnand %p1947_p0, %p1946_p13  ;;  %s215_s10 = scalar_lea.sflag [#allocation3], %s1615_s11 }
  0x54   : > { %s1664_s27 = scalar_lea.hbm %s1945_s1, %s1073_s15  ;;  %p1689_p7 = pneg %p1672_p3 }
  0x55   : > { %s1327_s26 = scalar_lea.hbm %s1664_s27, 256  ;;  %s1332_s15 = scalar_lea.hbm %s1945_s1, 1024 }
  0x56   : > { %p1328_p2 = scmp.ne.s32.totalorder %s1664_s27, %s1327_s26  ;;  %p1333_p10 = scmp.lt.u32.totalorder %s1664_s27, %s1945_s1 }
  0x57   : > { %p1334_p1 = scmp.lt.u32.totalorder %s1332_s15, %s1327_s26  ;;  %p1336_p5 = scmp.lt.u32.totalorder %s1327_s26, %s1664_s27 }
  0x58   : > { %p1330_p8 = pnand %p1689_p7, %p1328_p2 }
  0x59   : > { %p1335_p4 = por %p1334_p1, %p1333_p10 }
  0x5a   : > { %p1331_p9 = pneg %p1330_p8 }
  0x5b   : > { %p1337_p6 = por %p1336_p5, %p1335_p4 }
  0x5d   : > { %p1338_p11 = pnand %p1337_p6, %p1331_p9 }
  0x5f   : > { %1341 = shalt.err (!%p1338_p11)
}
  0x60   : > { %s1342_s23 = scalar_lea.vmem %s1666_s16, 256  ;;  %s1505_s12 = smov [#allocation6]  }
  0x61   : > { %p1343_p12 = scmp.ne.s32.totalorder %s1666_s16, %s1342_s23  ;;  %s1347_s9 = sshll.u32 %s1505_s12, 4  ;;  %s1348_s9 = int_to_ptr.vmem [resolvable:$false] %s1347_s9 }
  0x62   : > { %s1349_s8 = scalar_lea.vmem %s1348_s9, 512  ;;  %p1350_p2 = scmp.lt.s32.totalorder %s1666_s16, %s1348_s9 }
  0x63   : > { %p1345_p13 = pnand %p1343_p12, %p1689_p7  ;;  %p1351_p8 = scmp.lt.s32.totalorder %s1349_s8, %s1342_s23 }
  0x65   : > { %p1346_p0 = pneg %p1345_p13  ;;  %p1352_p10 = por %p1351_p8, %p1350_p2 }
  0x67   : > { %p1353_p1 = pnand %p1352_p10, %p1346_p0 }
  0x69   : > { %1356 = shalt.err (!%p1353_p1)
}
  0x6a   : > { %s1950_s26 = smov 8   ;;  %s1951_s15 = smov 128  }
  0x6b   : > { %1231 = dma.hbm_to_vmem [thread:$0]  (!%p1672_p3), %s1664_s27, 256, %s1666_s16, %s215_s10, %s1951_s15, %s1951_s15, %s1950_s26  }
  0x6c   : > { %s1952_s23 = sshll.u32 %s1681_s17, 4  ;;  %s235_s14 = sand.u32 1, %s1499_s21   ;;  %s1719_s23 = int_to_ptr.vmem [resolvable:$true] %s1952_s23 }
  0x6d   : > { %s1722_s12 = scalar_lea.sflag [#allocation8], %s235_s14  ;;  %s1357_s9 = scalar_lea.hbm %s1679_s13, 256 }
  0x6e   : > { %p1358_p9 = scmp.ne.s32.totalorder %s1679_s13, %s1357_s9  ;;  %s1362_s1 = scalar_lea.hbm %s1919_s2, 1024 }
  0x6f   : > { %p1363_p6 = scmp.lt.u32.totalorder %s1679_s13, %s1919_s2  ;;  %p1364_p11 = scmp.lt.u32.totalorder %s1362_s1, %s1357_s9 }
  0x70   : > { %p1360_p4 = pnand %p1358_p9, %p1689_p7  ;;  %p1366_p13 = scmp.lt.u32.totalorder %s1357_s9, %s1679_s13 }
  0x71   : > { %p1365_p12 = por %p1364_p11, %p1363_p6 }
  0x72   : > { %p1361_p5 = pneg %p1360_p4 }
  0x73   : > { %p1367_p0 = por %p1366_p13, %p1365_p12 }
  0x75   : > { %p1368_p2 = pnand %p1367_p0, %p1361_p5 }
  0x77   : > { %1371 = shalt.err (!%p1368_p2)
}
  0x78   : > { %s1372_s27 = scalar_lea.vmem %s1719_s23, 256  ;;  %s1506_s0 = smov [#allocation7]  }
  0x79   : > { %p1373_p8 = scmp.ne.s32.totalorder %s1719_s23, %s1372_s27  ;;  %s1377_s16 = sshll.u32 %s1506_s0, 4  ;;  %s1378_s16 = int_to_ptr.vmem [resolvable:$false] %s1377_s16 }
  0x7a   : > { %s1379_s3 = scalar_lea.vmem %s1378_s16, 512  ;;  %p1380_p9 = scmp.lt.s32.totalorder %s1719_s23, %s1378_s16 }
  0x7b   : > { %p1375_p10 = pnand %p1373_p8, %p1689_p7  ;;  %p1381_p4 = scmp.lt.s32.totalorder %s1379_s3, %s1372_s27 }
  0x7d   : > { %p1376_p1 = pneg %p1375_p10  ;;  %p1382_p6 = por %p1381_p4, %p1380_p9 }
  0x7f   : > { %p1383_p11 = pnand %p1382_p6, %p1376_p1 }
  0x81   : > { %1386 = shalt.err (!%p1383_p11)
}
  0x82   : > { %1234 = dma.hbm_to_vmem [thread:$0]  (!%p1672_p3), %s1679_s13, 256, %s1719_s23, %s1722_s12, %s1951_s15, %s1951_s15, %s1950_s26  }
  0x83   : > { %s1201_s1 = smul.u32 48, %s1615_s11  ;;  %s257_s27 = scalar_lea.sflag [#allocation11], %s1615_s11 }
  0x84   : > { %s1202_s20 = smul.u32 768, %s1499_s21  ;;  %s1392_s12 = scalar_lea.hbm %s1921_s4, 3072 }
  0x85   : > { %s260_s9 = scalar_lea.vmem [#allocation10], %s1201_s1 }
  0x86   : > { %s1754_s14 = scalar_lea.hbm %s1921_s4, %s1202_s20  ;;  %s267_s8 = sshll.u32 %s260_s9, 4  ;;  %s1756_s8 = int_to_ptr.vmem [resolvable:$true] %s267_s8 }
  0x87   : > { %s1387_s0 = scalar_lea.hbm %s1754_s14, 768  ;;  %p1393_p0 = scmp.lt.u32.totalorder %s1754_s14, %s1921_s4 }
  0x88   : > { %p1388_p5 = scmp.ne.s32.totalorder %s1754_s14, %s1387_s0  ;;  %p1394_p2 = scmp.lt.u32.totalorder %s1392_s12, %s1387_s0 }
  0x89   : > { %p1396_p10 = scmp.lt.u32.totalorder %s1387_s0, %s1754_s14 }
  0x8a   : > { %p1390_p12 = pnand %p1388_p5, %p1689_p7  ;;  %p1395_p8 = por %p1394_p2, %p1393_p0 }
  0x8c   : > { %p1391_p13 = pneg %p1390_p12  ;;  %p1397_p1 = por %p1396_p10, %p1395_p8 }
  0x8e   : > { %p1398_p9 = pnand %p1397_p1, %p1391_p13 }
  0x90   : > { %1401 = shalt.err (!%p1398_p9)
}
  0x91   : > { %s1402_s1 = scalar_lea.vmem %s1756_s8, 768  ;;  %s1507_s20 = smov [#allocation10]  }
  0x92   : > { %p1403_p4 = scmp.ne.s32.totalorder %s1756_s8, %s1402_s1  ;;  %s1407_s17 = sshll.u32 %s1507_s20, 4  ;;  %s1408_s17 = int_to_ptr.vmem [resolvable:$false] %s1407_s17 }
  0x93   : > { %s1409_s10 = scalar_lea.vmem %s1408_s17, 1536  ;;  %p1410_p5 = scmp.lt.s32.totalorder %s1756_s8, %s1408_s17 }
  0x94   : > { %p1405_p6 = pnand %p1403_p4, %p1689_p7  ;;  %p1411_p12 = scmp.lt.s32.totalorder %s1409_s10, %s1402_s1 }
  0x96   : > { %p1406_p11 = pneg %p1405_p6  ;;  %p1412_p0 = por %p1411_p12, %p1410_p5 }
  0x98   : > { %p1413_p2 = pnand %p1412_p0, %p1406_p11 }
  0x9a   : > { %1416 = shalt.err (!%p1413_p2)
}
  0x9b   : > { %1237 = dma.hbm_to_vmem [thread:$0]  (!%p1672_p3), %s1754_s14, 768, %s1756_s8, %s257_s27, %s1951_s15, %s1951_s15, %s1950_s26  }
  0x9c   : > { %p1953_p7 = scmp.ne.s32.totalorder %s1941_s7, 0 }
  0x9d   : > { %p1954_p13 = scmp.eq.s32.totalorder (!%p1953_p7), %s1562_s22, 0 }
  0x9e   : > { %279 = sbr.rel (%p1953_p7) target bundleno = 653 (0x28d), region = 40 }
  0xa5   : > { %1462 = dma.done.wait (%p1954_p13), [#allocation5], 16   ;;  %p1955_p8 = pmov %p1954_p13 }
  0xa6   : > { %s1792_s25 = sand.u32 1, %s1491_s19   ;;  %p1956_p3 = scmp.ne.s32.totalorder %s1938_s29, 0 }
  0xa7   : > { %1464 = vsyncadd (%p1955_p8), [#allocation5], 4294967280  ;;  %s1041_s28 = sshll.u32 %s1792_s25, 4  ;;  %s286_s11 = scalar_lea.sflag [#allocation3], %s1792_s25 }
  0xa8   : > { %s1796_s9 = scalar_lea.vmem [#allocation6], %s1041_s28 }
  0xa9   : > { %1466 = dma.done.wait (%p1956_p3), %s286_s11, 256  }
  0xaa   : > { %1468 = vsyncadd (%p1956_p3), %s286_s11, 4294967040  ;;  %s294_s7 = sand.u32 1, %s1562_s22   ;;  %s298_s15 = scalar_lea.vmem [#allocation7], %s1041_s28 }
  0xab   : > { %s295_s26 = scalar_lea.sflag [#allocation8], %s294_s7 }
  0xac   : > { %1470 = dma.done.wait (%p1956_p3), %s295_s26, 256  }
  0xad   : > { %1472 = vsyncadd (%p1956_p3), %s295_s26, 4294967040  ;;  %p1957_p10 = pmov %p1955_p8 }
  0xae   : > { %p1958_p1 = pmov %p1955_p8 }
  0xaf   : > { %1474 = dma.done.wait (%p1957_p10), [#allocation8], 1536  }
  0xb0   : > { %1476 = vsyncadd (%p1958_p1), [#allocation8], 4294965760  ;;  %s1203_s14 = smul.u32 48, %s1792_s25  ;;  %s308_s8 = scalar_lea.sflag [#allocation11], %s1792_s25 }
  0xb2   : > { %s1815_s27 = scalar_lea.vmem [#allocation10], %s1203_s14 }
  0xb3   : > { %1478 = dma.done.wait (%p1956_p3), %s308_s8, 768  }
  0xb4   : > { %1480 = vsyncadd (%p1956_p3), %s308_s8, 4294966528 }
  0xb5   : > { %316 = sfence }
  0xb6   : > { %v354_v0 = vld [vmem:[#allocation9] sm:$0xff]  ;;  %v355_v1 = vld [vmem:[#allocation9 + $0x8] sm:$0xff]  ;;  %v356_v2 = vld [vmem:[#allocation9 + $0x10] sm:$0xff]  ;;  %vm358_vm0 = vcmask 261120   ;;  %s349_s29 = sld [smem:[#allocation2 + %s1562_s22]]  ;;  %vm532_vm2 = vcmask 130048  }
  0xb7   : > { %v1159_v3 = vpack.c.bf16 %v355_v1, %v354_v0  ;;  %v357_v4 = vld [vmem:[#allocation9 + $0x18] sm:$0xff]  ;;  %v350_v5 = vld [vmem:[%s1796_s9] sm:$0xff]  ;;  %v537_v8 = vld [vmem:[#allocation9 + $0x28] sm:$0xff]  ;;  %s348_s0 = scalar_lea.vmem [#allocation12], %s1203_s14  ;;  %s1204_s13 = smul.u32 768, %s1562_s22 }
  0xb8   : > { %v1163_v6 = vpack.c.bf16 %v357_v4, %v356_v2  ;;  %1113 = vmatprep.mubr.msk.f32.mxu0 %vm358_vm0, %v350_v5  ;;  %v536_v7 = vld [vmem:[#allocation9 + $0x20] sm:$0xff]  ;;  %v353_v11 = vld [vmem:[%s298_s15 + $0x8] sm:$0xff]  ;;  %vm1825_vm1 = vmpackc.low %vm358_vm0, %vm358_vm0  ;;  %s887_s23 = sshll.u32 %s348_s0, 4  ;;  %s874_s22 = scalar_lea.sflag [#allocation4], %s1792_s25  ;;  %s1872_s23 = int_to_ptr.vmem [resolvable:$true] %s887_s23 }
  0xb9   : > { %1160 = vmatprep.subr.bf16.mxu0 %v1159_v3  ;;  %v352_v9 = vld [vmem:[%s298_s15] sm:$0xff]  ;;  %v1173_v10 = vpack.c.bf16 %v537_v8, %v536_v7  ;;  %v539_v14 = vld [vmem:[#allocation9 + $0x38] sm:$0xff]  ;;  %v706_v19 = vld [vmem:[#allocation9 + $0x48] sm:$0xff]  ;;  %s1870_s3 = scalar_lea.hbm %s1922_s5, %s1204_s13  ;;  %s1417_s1 = scalar_lea.vmem %s1872_s23, 768 }
  0xba   : > { %1162 = vmatpush3.bf16.msra.mxu0 %v1159_v3  ;;  %v538_v13 = vld [vmem:[#allocation9 + $0x30] sm:$0xff]  ;;  %v1167_v15 = vpack.c.bf16 %v353_v11, %v352_v9  ;;  %v351_v16 = vld [vmem:[%s1796_s9 + $0x8] sm:$0xff]  ;;  %v705_v18 = vld [vmem:[#allocation9 + $0x40] sm:$0xff]  ;;  %p1418_p9 = scmp.ne.s32.totalorder %s1872_s23, %s1417_s1  ;;  %p1961_p4 = scmp.ne.s32.totalorder %s1939_s30, 0 }
  0xbb   : > { %1164 = vmatprep.subr.bf16.mxu0 %v1163_v6  ;;  %v1177_v17 = vpack.c.bf16 %v539_v14, %v538_v13  ;;  %v1187_v20 = vpack.c.bf16 %v706_v19, %v705_v18  ;;  %v707_v21 = vld [vmem:[#allocation9 + $0x50] sm:$0xff]  ;;  %v708_v22 = vld [vmem:[#allocation9 + $0x58] sm:$0xff]  ;;  %s1508_s20 = smov [#allocation12]  }
  0xbc   : > { %1169 = vmatprep.subr.msk.bf16.mxu1 %vm1825_vm1, %v1167_v15  ;;  %v1191_v23 = vpack.c.bf16 %v708_v22, %v707_v21  ;;  %v441_v30 = vld [vmem:[%s1815_s27 + $0x8] sm:$0xff]  ;;  %v442_v31 = vstv %s349_s29  ;;  %v440_v32 = vld [vmem:[%s1815_s27] sm:$0xff]  ;;  %v1053_v39 = vld [vmem:[%s1815_s27 + $0x18] sm:$0xff]  ;;  %p1419_p6 = pnand %p1418_p9, %p1961_p4  ;;  %s1421_s17 = sshll.u32 %s1508_s20, 4  ;;  %s1422_s17 = int_to_ptr.vmem [resolvable:$false] %s1421_s17 }
  0xbd   : > { %1172 = vmatpush3.bf16.xpose.msk.msra.mxu1 %vm1825_vm1, %v1167_v15  ;;  %v444_v33 = vmul.f32 %v442_v31, %v441_v30  ;;  %v443_v34 = vmul.f32 %v442_v31, %v440_v32  ;;  %v1052_v40 = vld [vmem:[%s1815_s27 + $0x10] sm:$0xff]  ;;  %v619_v41 = vmul.f32 %v1053_v39, %v442_v31  ;;  %v1063_v47 = vld [vmem:[%s1815_s27 + $0x28] sm:$0xff]  ;;  %v1062_v48 = vld [vmem:[%s1815_s27 + $0x20] sm:$0xff]  ;;  %s1423_s10 = scalar_lea.vmem %s1422_s17, 1536  ;;  %p1424_p5 = scmp.lt.s32.totalorder %s1872_s23, %s1422_s17 }
  0xbe   : > { %1166 = vmatpush3.bf16.msra.mxu0 %v1163_v6  ;;  %1183 = vmatprep.subr.msk.bf16.mxu1 %vm1825_vm1, %v1167_v15  ;;  %v618_v42 = vmul.f32 %v1052_v40, %v442_v31  ;;  %v788_v49 = vmul.f32 %v1063_v47, %v442_v31  ;;  %v787_v50 = vmul.f32 %v1062_v48, %v442_v31  ;;  %p1420_p11 = pneg %p1419_p6  ;;  %p1425_p12 = scmp.lt.s32.totalorder %s1423_s10, %s1417_s1 }
  0xbf   : > { %1174 = vmatprep.subr.bf16.mxu0 %v1173_v10 }
  0xc0   : > { %p1426_p0 = por %p1425_p12, %p1424_p5 }
  0xc1   : > { %1114 = vmatmul.mubr.msk.f32.vlgmr.msra.gmra.mrb[0].mxu0 %vm358_vm0, %v351_v16 }
  0xc2   : > { %1176 = vmatpush3.bf16.msra.mxu0 %v1173_v10  ;;  %1131 = vmatprep.mubr.msk.f32.mxu0 %vm358_vm0, %v350_v5  ;;  %p1427_p2 = pnand %p1426_p0, %p1420_p11 }
  0xc3   : > { %1178 = vmatprep.subr.bf16.mxu0 %v1177_v17 }
  0xc6   : > { %1180 = vmatpush3.bf16.msra.mxu0 %v1177_v17 }
  0xc7   : > { %1188 = vmatprep.subr.bf16.mxu0 %v1187_v20 }
  0xc9   : > { %1132 = vmatmul.mubr.msk.f32.vlgmr.msra.gmra.mrb[2].mxu0 %vm358_vm0, %v351_v16 }
  0xca   : > { %1190 = vmatpush3.bf16.msra.mxu0 %v1187_v20  ;;  %1149 = vmatprep.mubr.msk.f32.mxu0 %vm358_vm0, %v350_v5 }
  0xcb   : > { %1192 = vmatprep.subr.bf16.mxu0 %v1191_v23 }
  0xce   : > { %1194 = vmatpush3.bf16.msra.mxu0 %v1191_v23 }
  0xd1   : > { %1150 = vmatmul.mubr.msk.f32.vlgmr.msra.gmra.mrb[4].mxu0 %vm358_vm0, %v351_v16 }
 0x194   : > { %v1115_v24 = vpop.f32.mrb[0].mxu0 }
 0x195   : > { %v431_v25 = vpop.f32.mrb[1].mxu0 }
 0x196   : > { %1120 = vmatprep.mubr.msk.f32.mxu1 %vm358_vm0, %v431_v25 }
 0x197   : > { %1121 = vmatmul.mubr.msk.f32.vlgmr.msra.gmra.mrb[0].mxu1 %vm358_vm0, %v1115_v24 }
 0x198   : > { %1186 = vmatpush3.bf16.xpose.msk.msra.mxu1 %vm1825_vm1, %v1167_v15 }
 0x199   : > { %1197 = vmatprep.subr.msk.bf16.mxu1 %vm1825_vm1, %v1167_v15 }
 0x19c   : > { %v1133_v26 = vpop.f32.mrb[2].mxu0 }
 0x19d   : > { %v606_v27 = vpop.f32.mrb[3].mxu0 }
 0x19e   : > { %1138 = vmatprep.mubr.msk.f32.mxu1 %vm358_vm0, %v606_v27 }
 0x19f   : > { %1139 = vmatmul.mubr.msk.f32.vlgmr.msra.gmra.mrb[2].mxu1 %vm358_vm0, %v1133_v26 }
 0x1a0   : > { %1200 = vmatpush3.bf16.xpose.msk.msra.mxu1 %vm1825_vm1, %v1167_v15 }
 0x1a4   : > { %v1151_v28 = vpop.f32.mrb[4].mxu0 }
 0x1a5   : > { %v775_v29 = vpop.f32.mrb[5].mxu0 }
 0x1a6   : > { %1156 = vmatprep.mubr.msk.f32.mxu1 %vm358_vm0, %v775_v29 }
 0x1a7   : > { %1157 = vmatmul.mubr.msk.f32.vlgmr.msra.gmra.mrb[4].mxu1 %vm358_vm0, %v1151_v28 }
 0x26a   : > { %v1122_v35 = vpop.f32.mrb[0].mxu1 }
 0x26b   : > { %v529_v36 = vadd.f32 %v1122_v35, %v444_v33  ;;  %v523_v37 = vpop.f32.mrb[1].mxu1 }
 0x26c   : > { %v524_v38 = vadd.f32 %v523_v37, %v443_v34 }
 0x26d   : > { %534 = vst.msk [vmem:[%s348_s0 + $0x8] sm:$0xff] %vm532_vm2, %v529_v36 }
 0x26e   : > { %533 = vst.msk [vmem:[%s348_s0] sm:$0xff] %vm532_vm2, %v524_v38 }
 0x272   : > { %v1140_v43 = vpop.f32.mrb[2].mxu1 }
 0x273   : > { %v698_v44 = vadd.f32 %v1140_v43, %v619_v41  ;;  %v692_v45 = vpop.f32.mrb[3].mxu1 }
 0x274   : > { %v693_v46 = vadd.f32 %v692_v45, %v618_v42 }
 0x275   : > { %1059 = vst.msk [vmem:[%s348_s0 + $0x18] sm:$0xff] %vm532_vm2, %v698_v44 }
 0x276   : > { %1058 = vst.msk [vmem:[%s348_s0 + $0x10] sm:$0xff] %vm532_vm2, %v693_v46 }
 0x27a   : > { %v1158_v51 = vpop.f32.mrb[4].mxu1 }
 0x27b   : > { %v867_v52 = vadd.f32 %v1158_v51, %v788_v49  ;;  %v861_v53 = vpop.f32.mrb[5].mxu1 }
 0x27c   : > { %v862_v54 = vadd.f32 %v861_v53, %v787_v50 }
 0x27d   : > { %1069 = vst.msk [vmem:[%s348_s0 + $0x28] sm:$0xff] %vm532_vm2, %v867_v52 }
 0x27e   : > { %1068 = vst.msk [vmem:[%s348_s0 + $0x20] sm:$0xff] %vm532_vm2, %v862_v54 }
 0x27f   : > { %1430 = shalt.err (!%p1427_p2)
}
 0x280   : > { %s1431_s28 = scalar_lea.hbm %s1870_s3, 768  ;;  %s1435_s7 = scalar_lea.hbm %s1922_s5, 3072 }
 0x281   : > { %p1432_p7 = scmp.ne.s32.totalorder %s1870_s3, %s1431_s28  ;;  %p1436_p3 = scmp.lt.u32.totalorder %s1870_s3, %s1922_s5 }
 0x282   : > { %p1437_p10 = scmp.lt.u32.totalorder %s1435_s7, %s1431_s28  ;;  %p1439_p9 = scmp.lt.u32.totalorder %s1431_s28, %s1870_s3 }
 0x283   : > { %p1433_p13 = pnand %p1432_p7, %p1961_p4 }
 0x284   : > { %p1438_p1 = por %p1437_p10, %p1436_p3 }
 0x285   : > { %p1434_p8 = pneg %p1433_p13 }
 0x286   : > { %p1440_p6 = por %p1439_p9, %p1438_p1 }
 0x288   : > { %p1441_p11 = pnand %p1440_p6, %p1434_p8 }
 0x28a   : > { %1444 = shalt.err (!%p1441_p11)
}
 0x28b   : > { %s1509_s14 = smov 128   ;;  %s1510_s8 = smov 8  }
 0x28c   : > { %1219 = dma.vmem_to_hbm [thread:$0]  (%p1961_p4), %s1872_s23, 768, %s1870_s3, %s874_s22, %s1509_s14, %s1509_s14, %s1510_s8  }
 0x28d PF: > { %p1247_p5 = scmp.ge.s32.totalorder %s1499_s21, 2  ;;  %s902_s27 = sand.u32 1, %s1487_s18  }
 0x28e   : > { %p1962_p12 = scmp.ne.s32.totalorder %s1940_s6, 0  ;;  %s903_s29 = scalar_lea.sflag [#allocation4], %s902_s27 }
 0x290   : > { %p1239_p0 = pnand %p1247_p5, %p1962_p12 }
 0x292   : > { %1482 = dma.done.wait (!%p1239_p0), %s903_s29, 768  }
 0x293   : > { %1484 = vsyncadd (!%p1239_p0), %s903_s29, 4294966528  ;;  %s1963_s0 = sld [smem:[#allocation19_spill]]  ;;  %s1964_s20 = sld [smem:[#allocation20_spill]] }
 0x294   : > { %p25_p2 = scmp.ge.s32.totalorder %s1566_s24, 6   ;;  %s1965_s18 = smov %s1491_s19 }
 0x295   : > { %s1967_s21 = smov %s1566_s24 }
 0x296   :  { %27 = sbr.rel (!%p25_p2) target bundleno = 14 (0xe), region = 126 }
 0x299   : > { %s1966_s19 = smov %s1963_s0 }
 0x29d   :  { %908 = vsyncpa [#allocation3], 1 }
 0x29e   :  { %910 = vsyncpa [#allocation3 + $0x1], 1 }
 0x29f   :  { %911 = vsyncpa [#allocation8], 1 }
 0x2a0   :  { %913 = vsyncpa [#allocation8 + $0x1], 1 }
 0x2a1   :  { %914 = vsyncpa [#allocation11], 1 }
 0x2a2   :  { %916 = vsyncpa [#allocation11 + $0x1], 1 }
 0x2a3   :  { %917 = vsyncpa [#allocation4], 1 }
 0x2a4   :  { %919 = vsyncpa [#allocation4 + $0x1], 1 }
 0x2a5   :  { %920 = vsyncpa [#allocation5], 1 }
 0x2a6   :  { %922 = vsyncpa [#allocation5 + $0x1], 1 }

</bundles_post_ra>
